<compile_context>
chip_gen: v6e
topology: v6e:2x2x1
jax: 0.10.0
libtpu: 0.0.40
codegen_flags: <defaults>
</compile_context>

<pallas_src>
import functools

import jax
import jax.numpy as jnp
from jax.experimental import pallas as pl
from jax.experimental.pallas import tpu as pltpu


def _vmem_budget_and_limit():
    """Generation-aware VMEM sizing (tile budget, scoped vmem limit)."""
    cap = None
    try:
        cap = getattr(pltpu.get_tpu_info(), "vmem_capacity_bytes", None)
    except Exception:
        cap = None
    if cap is None:
        cap = 64 * 1024 * 1024                       # assume the smallest (v7x) part
    if cap >= 120 * 1024 * 1024:                     # v5e / v6e: 128 MiB physical
        return 88 * 1024 * 1024, 112 * 1024 * 1024
    return 42 * 1024 * 1024, 56 * 1024 * 1024        # v7x: 64 MiB physical


def _pick_tile_rows(rows, d_lane, in_itemsize, out_itemsize, budget,
                    min_steps=4, min_bytes_for_split=2 * 1024 * 1024):
    """Largest sublane-aligned row tile that fits `budget`, preferring divisors.

    Non-trivial inputs are forced into >= `min_steps` grid steps so the VPU/EUP
    work overlaps with DMA prefetch/writeback (grid=(1,) has no pipelining).
    """
    # Sublane packing: f32 -> 8 rows, bf16 -> 16, int8/fp8 -> 32.
    align = 8 * max(1, 4 // max(1, in_itemsize))
    # Per row of VMEM: double-buffered input + output DMA tiles plus ~2 live f32
    # temps (the upcast x and the fused output expression). No centered temp.
    per_row = d_lane * (2 * in_itemsize + 2 * out_itemsize + 2 * 4)
    t = max(align, budget // per_row)

    if rows * d_lane * in_itemsize > min_bytes_for_split:
        t = min(t, -(-rows // min_steps))            # ceil(rows / min_steps)

    t = int(min(t, rows))
    if t >= rows:
        return rows                                  # one block covers every row
    t = max(align, (t // align) * align)
    # Prefer a tile that divides rows so there is no ragged tail block.
    for cand in range(t, max(t // 2, align - 1), -align):
        if rows % cand == 0:
            return cand
    return t                                         # ragged tail: Pallas clips the boundary store


def layernorm_kernel(x_ref, gamma_ref, beta_ref, o_ref, *, eps, d_model, n_seg):
    x = x_ref[...].astype(jnp.float32)               # (tile_rows, n_seg * d_model)
    # torch.var default is *unbiased*: divide by N-1 (guard d_model == 1).
    scale = d_model / (d_model - 1) if d_model > 1 else 1.0

    def _normalize(seg):
        mean = jnp.mean(seg, axis=-1, keepdims=True)
        ex2 = jnp.mean(seg * seg, axis=-1, keepdims=True)
        var = (ex2 - mean * mean) * scale            # one pass: no (x - mean) temp kept live
        inv = jax.lax.rsqrt(var + eps)               # EUP rsqrt
        return (seg - mean) * inv

    if n_seg == 1:
        out = _normalize(x)
    else:
        # Narrow-feature path: n_seg original rows are packed along the lane axis;
        # run n_seg independent segmented normalizations and re-concatenate.
        out = jnp.concatenate(
            [_normalize(x[:, g * d_model:(g + 1) * d_model]) for g in range(n_seg)],
            axis=-1)

    # gamma/beta are pre-tiled / pre-cast to f32 in the wrapper and stay
    # VMEM-resident (constant index_map -> never re-DMA'd per step).
    o_ref[...] = (out * gamma_ref[...] + beta_ref[...]).astype(o_ref.dtype)


def layer_norm(x, gamma, beta, eps=1e-5, tile_rows=None):
    """x: (..., d_model) -> same shape, normalized along the last axis."""
    orig_shape = x.shape
    d_model = orig_shape[-1]
    x2 = x.reshape(-1, d_model)
    rows = x2.shape[0]

    # Narrow-feature repacking: fold n_seg = 128 // d_model rows into one 128-wide
    # lane row so every output store is an unmasked, lane-dense vst.
    n_seg = 1
    if d_model < 128 and 128 % d_model == 0:
        g = 128 // d_model
        if g > 1 and rows % g == 0:
            n_seg = g
            rows = rows // g
            x2 = x2.reshape(rows, n_seg * d_model)
    d_lane = n_seg * d_model

    budget, vmem_limit = _vmem_budget_and_limit()
    if tile_rows is None:
        tile_rows = _pick_tile_rows(rows, d_lane, x2.dtype.itemsize,
                                    x2.dtype.itemsize, budget)

    gamma2 = jnp.tile(gamma.reshape(1, d_model).astype(jnp.float32), (1, n_seg))
    beta2 = jnp.tile(beta.reshape(1, d_model).astype(jnp.float32), (1, n_seg))

    grid = (pl.cdiv(rows, tile_rows),)
    kernel = functools.partial(layernorm_kernel, eps=eps, d_model=d_model,
                               n_seg=n_seg)

    out = pl.pallas_call(
        kernel,
        out_shape=jax.ShapeDtypeStruct((rows, d_lane), x.dtype),
        grid_spec=pltpu.PrefetchScalarGridSpec(
            num_scalar_prefetch=0,
            grid=grid,
            in_specs=[
                pl.BlockSpec((tile_rows, d_lane), lambda i: (i, 0)),
                pl.BlockSpec((1, d_lane), lambda i: (0, 0)),   # gamma, resident
                pl.BlockSpec((1, d_lane), lambda i: (0, 0)),   # beta, resident
            ],
            out_specs=pl.BlockSpec((tile_rows, d_lane), lambda i: (i, 0)),
        ),
        compiler_params=pltpu.CompilerParams(
            # "parallel" lets the row stream shard across TensorCores; if v7x
            # profiling shows one TC idle, switch this axis to pltpu.CORE_PARALLEL.
            dimension_semantics=("parallel",),
            vmem_limit_bytes=vmem_limit,   # mandatory on v5e (16 MiB default scope)
        ),
    )(x2, gamma2, beta2)

    return out.reshape(orig_shape)


if __name__ == "__main__":
    key = jax.random.PRNGKey(0)

    def _ref(x, gamma, beta, eps):
        d = x.shape[-1]
        mean = jnp.mean(x, axis=-1, keepdims=True)
        var = jnp.sum((x - mean) ** 2, axis=-1, keepdims=True) / max(d - 1, 1)
        return gamma * ((x - mean) / jnp.sqrt(var + eps)) + beta

    # 1) Module-sized demo shape (narrow d_model -> exercises the lane-packing path).
    batch, seq, d_model = 2, 8, 32
    k1, k2 = jax.random.split(key)
    x = jax.random.normal(k1, (batch, seq, d_model), dtype=jnp.float32)
    gamma = jnp.ones((d_model,), dtype=jnp.float32)        # nn.Parameter(torch.ones)
    beta = jnp.zeros((d_model,), dtype=jnp.float32)        # nn.Parameter(torch.zeros)
    out = jax.block_until_ready(layer_norm(x, gamma, beta, eps=1e-5))
    assert jnp.allclose(out, _ref(x, gamma, beta, 1e-5), atol=1e-5, rtol=1e-5), \
        "mismatch vs reference (d_model=32 packed path)"

    # 2) Lane-dense d_model (the standard transformer-width path, n_seg == 1).
    batch2, seq2, d_model2 = 2, 16, 128
    xb = jax.random.normal(k2, (batch2, seq2, d_model2), dtype=jnp.float32)
    gb = jax.random.normal(jax.random.PRNGKey(1), (d_model2,), dtype=jnp.float32)
    bb = jax.random.normal(jax.random.PRNGKey(2), (d_model2,), dtype=jnp.float32)
    outb = jax.block_until_ready(layer_norm(xb, gb, bb, eps=1e-5))
    assert jnp.allclose(outb, _ref(xb, gb, bb, 1e-5), atol=1e-5, rtol=1e-5), \
        "mismatch vs reference (d_model=128 path)"

    print("KERNEL_OK")
</pallas_src>

<mosaic_0001>
module attributes {stable_mosaic.version = 11 : i64} {
  func.func @layernorm_kernel(%arg0: i32, %arg1: memref<4x128xf32, #tpu.memory_space<vmem>>, %arg2: memref<1x128xf32, #tpu.memory_space<vmem>>, %arg3: memref<1x128xf32, #tpu.memory_space<vmem>>, %arg4: memref<4x128xf32, #tpu.memory_space<vmem>>) attributes {dimension_semantics = [#tpu.dimension_semantics<parallel>], iteration_bounds = array<i64: 1>, scalar_prefetch = 0 : i64, scratch_operands = 0 : i64, tpu.core_type = #tpu.core_type<tc>, window_params = [{transform_indices = @transform_0, window_bounds = array<i64: 4, 128>}, {pipeline_mode = #tpu.pipeline_mode<synchronous>, transform_indices = @transform_1, window_bounds = array<i64: 1, 128>}, {pipeline_mode = #tpu.pipeline_mode<synchronous>, transform_indices = @transform_2, window_bounds = array<i64: 1, 128>}, {transform_indices = @transform_3, window_bounds = array<i64: 4, 128>}]} {
    %c0 = arith.constant 0 : index
    %c0_0 = arith.constant 0 : index
    %0 = vector.load %arg1[%c0, %c0_0] : memref<4x128xf32, #tpu.memory_space<vmem>>, vector<4x128xf32>
    %1 = vector.extract_strided_slice %0 {offsets = [0, 0], sizes = [4, 32], strides = [1, 1]} : vector<4x128xf32> to vector<4x32xf32>
    %cst = arith.constant dense<0.000000e+00> : vector<4xf32>
    %2 = vector.multi_reduction <add>, %1, %cst [1] : vector<4x32xf32> to vector<4xf32>
    %3 = vector.shape_cast %2 : vector<4xf32> to vector<4x1xf32>
    %cst_1 = arith.constant 3.200000e+01 : f32
    %4 = vector.broadcast %cst_1 : f32 to vector<4x1xf32>
    %5 = arith.divf %3, %4 : vector<4x1xf32>
    %6 = arith.mulf %1, %1 : vector<4x32xf32>
    %cst_2 = arith.constant dense<0.000000e+00> : vector<4xf32>
    %7 = vector.multi_reduction <add>, %6, %cst_2 [1] : vector<4x32xf32> to vector<4xf32>
    %8 = vector.shape_cast %7 : vector<4xf32> to vector<4x1xf32>
    %cst_3 = arith.constant 3.200000e+01 : f32
    %9 = vector.broadcast %cst_3 : f32 to vector<4x1xf32>
    %10 = arith.divf %8, %9 : vector<4x1xf32>
    %11 = arith.mulf %5, %5 : vector<4x1xf32>
    %12 = arith.subf %10, %11 : vector<4x1xf32>
    %cst_4 = arith.constant 1.03225803 : f32
    %13 = vector.broadcast %cst_4 : f32 to vector<4x1xf32>
    %14 = arith.mulf %12, %13 : vector<4x1xf32>
    %cst_5 = arith.constant 9.99999974E-6 : f32
    %15 = vector.broadcast %cst_5 : f32 to vector<4x1xf32>
    %16 = arith.addf %14, %15 : vector<4x1xf32>
    %17 = math.rsqrt %16 : vector<4x1xf32>
    %18 = vector.broadcast %5 : vector<4x1xf32> to vector<4x32xf32>
    %19 = arith.subf %1, %18 : vector<4x32xf32>
    %20 = vector.broadcast %17 : vector<4x1xf32> to vector<4x32xf32>
    %21 = arith.mulf %19, %20 : vector<4x32xf32>
    %22 = vector.extract_strided_slice %0 {offsets = [0, 32], sizes = [4, 32], strides = [1, 1]} : vector<4x128xf32> to vector<4x32xf32>
    %cst_6 = arith.constant dense<0.000000e+00> : vector<4xf32>
    %23 = vector.multi_reduction <add>, %22, %cst_6 [1] : vector<4x32xf32> to vector<4xf32>
    %24 = vector.shape_cast %23 : vector<4xf32> to vector<4x1xf32>
    %cst_7 = arith.constant 3.200000e+01 : f32
    %25 = vector.broadcast %cst_7 : f32 to vector<4x1xf32>
    %26 = arith.divf %24, %25 : vector<4x1xf32>
    %27 = arith.mulf %22, %22 : vector<4x32xf32>
    %cst_8 = arith.constant dense<0.000000e+00> : vector<4xf32>
    %28 = vector.multi_reduction <add>, %27, %cst_8 [1] : vector<4x32xf32> to vector<4xf32>
    %29 = vector.shape_cast %28 : vector<4xf32> to vector<4x1xf32>
    %cst_9 = arith.constant 3.200000e+01 : f32
    %30 = vector.broadcast %cst_9 : f32 to vector<4x1xf32>
    %31 = arith.divf %29, %30 : vector<4x1xf32>
    %32 = arith.mulf %26, %26 : vector<4x1xf32>
    %33 = arith.subf %31, %32 : vector<4x1xf32>
    %cst_10 = arith.constant 1.03225803 : f32
    %34 = vector.broadcast %cst_10 : f32 to vector<4x1xf32>
    %35 = arith.mulf %33, %34 : vector<4x1xf32>
    %cst_11 = arith.constant 9.99999974E-6 : f32
    %36 = vector.broadcast %cst_11 : f32 to vector<4x1xf32>
    %37 = arith.addf %35, %36 : vector<4x1xf32>
    %38 = math.rsqrt %37 : vector<4x1xf32>
    %39 = vector.broadcast %26 : vector<4x1xf32> to vector<4x32xf32>
    %40 = arith.subf %22, %39 : vector<4x32xf32>
    %41 = vector.broadcast %38 : vector<4x1xf32> to vector<4x32xf32>
    %42 = arith.mulf %40, %41 : vector<4x32xf32>
    %43 = vector.extract_strided_slice %0 {offsets = [0, 64], sizes = [4, 32], strides = [1, 1]} : vector<4x128xf32> to vector<4x32xf32>
    %cst_12 = arith.constant dense<0.000000e+00> : vector<4xf32>
    %44 = vector.multi_reduction <add>, %43, %cst_12 [1] : vector<4x32xf32> to vector<4xf32>
    %45 = vector.shape_cast %44 : vector<4xf32> to vector<4x1xf32>
    %cst_13 = arith.constant 3.200000e+01 : f32
    %46 = vector.broadcast %cst_13 : f32 to vector<4x1xf32>
    %47 = arith.divf %45, %46 : vector<4x1xf32>
    %48 = arith.mulf %43, %43 : vector<4x32xf32>
    %cst_14 = arith.constant dense<0.000000e+00> : vector<4xf32>
    %49 = vector.multi_reduction <add>, %48, %cst_14 [1] : vector<4x32xf32> to vector<4xf32>
    %50 = vector.shape_cast %49 : vector<4xf32> to vector<4x1xf32>
    %cst_15 = arith.constant 3.200000e+01 : f32
    %51 = vector.broadcast %cst_15 : f32 to vector<4x1xf32>
    %52 = arith.divf %50, %51 : vector<4x1xf32>
    %53 = arith.mulf %47, %47 : vector<4x1xf32>
    %54 = arith.subf %52, %53 : vector<4x1xf32>
    %cst_16 = arith.constant 1.03225803 : f32
    %55 = vector.broadcast %cst_16 : f32 to vector<4x1xf32>
    %56 = arith.mulf %54, %55 : vector<4x1xf32>
    %cst_17 = arith.constant 9.99999974E-6 : f32
    %57 = vector.broadcast %cst_17 : f32 to vector<4x1xf32>
    %58 = arith.addf %56, %57 : vector<4x1xf32>
    %59 = math.rsqrt %58 : vector<4x1xf32>
    %60 = vector.broadcast %47 : vector<4x1xf32> to vector<4x32xf32>
    %61 = arith.subf %43, %60 : vector<4x32xf32>
    %62 = vector.broadcast %59 : vector<4x1xf32> to vector<4x32xf32>
    %63 = arith.mulf %61, %62 : vector<4x32xf32>
    %64 = vector.extract_strided_slice %0 {offsets = [0, 96], sizes = [4, 32], strides = [1, 1]} : vector<4x128xf32> to vector<4x32xf32>
    %cst_18 = arith.constant dense<0.000000e+00> : vector<4xf32>
    %65 = vector.multi_reduction <add>, %64, %cst_18 [1] : vector<4x32xf32> to vector<4xf32>
    %66 = vector.shape_cast %65 : vector<4xf32> to vector<4x1xf32>
    %cst_19 = arith.constant 3.200000e+01 : f32
    %67 = vector.broadcast %cst_19 : f32 to vector<4x1xf32>
    %68 = arith.divf %66, %67 : vector<4x1xf32>
    %69 = arith.mulf %64, %64 : vector<4x32xf32>
    %cst_20 = arith.constant dense<0.000000e+00> : vector<4xf32>
    %70 = vector.multi_reduction <add>, %69, %cst_20 [1] : vector<4x32xf32> to vector<4xf32>
    %71 = vector.shape_cast %70 : vector<4xf32> to vector<4x1xf32>
    %cst_21 = arith.constant 3.200000e+01 : f32
    %72 = vector.broadcast %cst_21 : f32 to vector<4x1xf32>
    %73 = arith.divf %71, %72 : vector<4x1xf32>
    %74 = arith.mulf %68, %68 : vector<4x1xf32>
    %75 = arith.subf %73, %74 : vector<4x1xf32>
    %cst_22 = arith.constant 1.03225803 : f32
    %76 = vector.broadcast %cst_22 : f32 to vector<4x1xf32>
    %77 = arith.mulf %75, %76 : vector<4x1xf32>
    %cst_23 = arith.constant 9.99999974E-6 : f32
    %78 = vector.broadcast %cst_23 : f32 to vector<4x1xf32>
    %79 = arith.addf %77, %78 : vector<4x1xf32>
    %80 = math.rsqrt %79 : vector<4x1xf32>
    %81 = vector.broadcast %68 : vector<4x1xf32> to vector<4x32xf32>
    %82 = arith.subf %64, %81 : vector<4x32xf32>
    %83 = vector.broadcast %80 : vector<4x1xf32> to vector<4x32xf32>
    %84 = arith.mulf %82, %83 : vector<4x32xf32>
    %85 = tpu.concatenate %21, %42, %63, %84 in 1 : vector<4x32xf32>, vector<4x32xf32>, vector<4x32xf32>, vector<4x32xf32> -> vector<4x128xf32>
    %c0_24 = arith.constant 0 : index
    %c0_25 = arith.constant 0 : index
    %86 = vector.load %arg2[%c0_24, %c0_25] : memref<1x128xf32, #tpu.memory_space<vmem>>, vector<1x128xf32>
    %87 = vector.broadcast %86 : vector<1x128xf32> to vector<4x128xf32>
    %88 = arith.mulf %85, %87 : vector<4x128xf32>
    %c0_26 = arith.constant 0 : index
    %c0_27 = arith.constant 0 : index
    %89 = vector.load %arg3[%c0_26, %c0_27] : memref<1x128xf32, #tpu.memory_space<vmem>>, vector<1x128xf32>
    %90 = vector.broadcast %89 : vector<1x128xf32> to vector<4x128xf32>
    %91 = arith.addf %88, %90 : vector<4x128xf32>
    %c0_28 = arith.constant 0 : index
    %c0_29 = arith.constant 0 : index
    %92 = vector.load %arg4[%c0_28, %c0_29] : memref<4x128xf32, #tpu.memory_space<vmem>>, vector<4x128xf32>
    tpu.vector_store %arg4[%c0_28, %c0_29], %91 {strides = array<i32>} : memref<4x128xf32, #tpu.memory_space<vmem>>, vector<4x128xf32>,
    return
  }
  func.func @transform_0(%arg0: i32) -> (i32, i32) {
    %c0_i32 = arith.constant 0 : i32
    %c0_i32_0 = arith.constant 0 : i32
    return %arg0, %c0_i32 : i32, i32
  }
  func.func @transform_1(%arg0: i32) -> (i32, i32) {
    %c0_i32 = arith.constant 0 : i32
    %c0_i32_0 = arith.constant 0 : i32
    %c0_i32_1 = arith.constant 0 : i32
    return %c0_i32, %c0_i32_0 : i32, i32
  }
  func.func @transform_2(%arg0: i32) -> (i32, i32) {
    %c0_i32 = arith.constant 0 : i32
    %c0_i32_0 = arith.constant 0 : i32
    %c0_i32_1 = arith.constant 0 : i32
    return %c0_i32, %c0_i32_0 : i32, i32
  }
  func.func @transform_3(%arg0: i32) -> (i32, i32) {
    %c0_i32 = arith.constant 0 : i32
    %c0_i32_0 = arith.constant 0 : i32
    return %arg0, %c0_i32 : i32, i32
  }
}

</mosaic_0001>

<bundles_post_ra>
// kernel: tpu_custom_call.1
= control target key start
LH: loop header
LB: loop body
LE: loop exit
PB: predicated region body
PF: predicated region fallthrough
CT: control target
= control target key end

     0   :  { %8 = vsyncpa [#allocation3], 0  ;;  %s265_s0 = inlined_call_operand.hbm [shape: f32[4,128], index: 0, kind: input, shape index: {}]   ;;  %s266_s1 = inlined_call_operand.vmem [shape: f32[1,128], index: 1, kind: input, shape index: {}]   ;;  %s267_s2 = inlined_call_operand.vmem [shape: f32[1,128], index: 2, kind: input, shape index: {}]   ;;  %s268_s3 = inlined_call_operand.hbm [shape: f32[4,128], index: 3, kind: output, shape index: {}]  }
   0x1   :  { %9 = vsyncpa [#allocation4], 0  ;;  %s208_s12 = smov [#allocation2]  }
   0x2   :  { %s16_s13 = sshll.u32 %s208_s12, 4  ;;  %s17_s13 = int_to_ptr.vmem [resolvable:$true] %s16_s13 }
   0x3   :  { %s172_s14 = scalar_lea.vmem %s17_s13, 64  ;;  %p177_p1 = scmp.lt.s32.totalorder %s17_s13, %s17_s13 }
   0x4   :  { %p173_p0 = scmp.ne.s32.totalorder %s17_s13, %s172_s14  ;;  %p178_p2 = scmp.lt.s32.totalorder %s172_s14, %s172_s14 }
   0x6   :  { %p179_p3 = por %p178_p2, %p177_p1 }
   0x8   :  { %p180_p4 = pnand %p179_p3, %p173_p0 }
   0xa   :  { %183 = shalt.err (!%p180_p4)
}
   0xb   :  { %19 = dma.hbm_to_vmem [thread:$0]  %s265_s0, 64, %s17_s13, [#allocation3]  }
   0xc   :  { %204 = dma.done.wait [#allocation3], 64  }
   0xd   :  { %205 = vsyncadd [#allocation3], 4294967232  ;;  %vm28_vm0 = vcmask 257024   ;;  %v236_v0 = vld [vmem:[#allocation2] sm:$0xf]  ;;  %s209_s17 = smov 96  }
   0xe   :  { %47 = vrot.lane.b32.xlu1 %v236_v0, %s209_s17  ;;  %v29_v1 = vsel %vm28_vm0, %v236_v0, 0.0  ;;  %v34_v2 = vmul.f32 %v236_v0, %v236_v0  ;;  %s210_s18 = smov 64   ;;  %s211_s0 = smov 32   ;;  %vm111_vm1 = vcmask 261120   ;;  %vm113_vm2 = vcmask 523264  }
   0xf   :  { %30 = vadd.xlane.f32.xlu0 %v29_v1  ;;  %vm115_vm3 = vcmask 785408   ;;  %v149_v61 = vld [vmem:[%s266_s1] ss:$0 sm:$0xff]  ;;  %s212_s23 = smov [#allocation5]  }
  0x10   :  { %v35_v3 = vsel %vm28_vm0, %v34_v2, 0.0  ;;  %v150_v1 = vld [vmem:[%s267_s2] ss:$0 sm:$0xff]  ;;  %s140_s24 = sshll.u32 %s212_s23, 4  ;;  %s141_s24 = int_to_ptr.vmem [resolvable:$true] %s140_s24 }
  0x11   :  { %s184_s25 = scalar_lea.vmem %s141_s24, 64  ;;  %p189_p6 = scmp.lt.s32.totalorder %s141_s24, %s141_s24 }
  0x12   :  { %69 = vrot.lane.b32.xlu1 %v236_v0, %s210_s18  ;;  %p185_p5 = scmp.ne.s32.totalorder %s141_s24, %s184_s25  ;;  %p190_p7 = scmp.lt.s32.totalorder %s184_s25, %s184_s25 }
  0x13   :  { %36 = vadd.xlane.f32.xlu0 %v35_v3 }
  0x14   :  { %p191_p8 = por %p190_p7, %p189_p6 }
  0x16   :  { %90 = vrot.lane.b32.xlu1 %v236_v0, %s211_s0  ;;  %p192_p9 = pnand %p191_p8, %p185_p5 }
  0x1a   :  { %76 = vrot.lane.b32.xlu1 %v34_v2, %s210_s18 }
  0x1e   :  { %97 = vrot.lane.b32.xlu1 %v34_v2, %s211_s0 }
  0x29   :  { %55 = vrot.lane.b32.xlu0 %v34_v2, %s209_s17 }
  0x80   :  { %v48_v4 = vpop.permute.xlu1 %47 }
  0x81   :  { %v50_v5 = vsel %vm28_vm0, %v48_v4, 0.0 }
  0x82   :  { %51 = vadd.xlane.f32.xlu1 %v50_v5 }
  0x84   :  { %v70_v6 = vpop.permute.xlu1 %69 }
  0x85   :  { %v72_v7 = vsel %vm28_vm0, %v70_v6, 0.0 }
  0x86   :  { %73 = vadd.xlane.f32.xlu1 %v72_v7 }
  0x88   :  { %v91_v8 = vpop.permute.xlu1 %90 }
  0x89   :  { %v93_v23 = vsel %vm28_vm0, %v91_v8, 0.0 }
  0x8c   :  { %v77_v9 = vpop.permute.xlu1 %76 }
  0x8d   :  { %v79_v10 = vsel %vm28_vm0, %v77_v9, 0.0 }
  0x8e   :  { %80 = vadd.xlane.f32.xlu1 %v79_v10 }
  0x90   :  { %v98_v11 = vpop.permute.xlu1 %97 }
  0x91   :  { %v100_v12 = vsel %vm28_vm0, %v98_v11, 0.0 }
  0x92   :  { %101 = vadd.xlane.f32.xlu1 %v100_v12 }
  0x98   :  { %v31_v13 = vpop.xlane.xlu0 %30 }
  0x99   :  { %v33_v14 = vmul.f32 0.03125, %v31_v13 }
  0x9b   :  { %v39_v16 = vmul.f32 %v33_v14, %v33_v14  ;;  %v44_v24 = vsub.f32 %v236_v0, %v33_v14 }
  0x9c   :  { %v37_v15 = vpop.xlane.xlu0 %36 }
  0x9d   :  { %v38_v17 = vmul.f32 0.03125, %v37_v15 }
  0x9f   :  { %v40_v18 = vsub.f32 %v38_v17, %v39_v16 }
  0xa0   :  { %v56_v19 = vpop.permute.xlu0 %55 }
  0xa1   :  { %v41_v20 = vmul.f32 1.032258, %v40_v18  ;;  %v58_v21 = vsel %vm28_vm0, %v56_v19, 0.0 }
  0xa2   :  { %59 = vadd.xlane.f32.xlu0 %v58_v21 }
  0xa3   :  { %v42_v22 = vadd.f32 1e-05, %v41_v20 }
  0xa5   :  { %156 = vrsqrt.f32 %v42_v22 }
  0xa6   :  { %94 = vadd.xlane.f32.xlu0 %v93_v23 }
  0xb2   :  { %v157_v25 = vpop.eup %156 }
  0xb3   :  { %v45_v26 = vmul.f32 %v157_v25, %v44_v24 }
 0x10b   :  { %v52_v27 = vpop.xlane.xlu1 %51 }
 0x10c   :  { %v53_v33 = vmul.f32 0.03125, %v52_v27 }
 0x10e   :  { %v62_v36 = vmul.f32 %v53_v33, %v53_v33  ;;  %v67_v51 = vsub.f32 %v236_v0, %v53_v33 }
 0x10f   :  { %v74_v28 = vpop.xlane.xlu1 %73 }
 0x110   :  { %v75_v29 = vmul.f32 0.03125, %v74_v28 }
 0x112   :  { %v83_v31 = vmul.f32 %v75_v29, %v75_v29  ;;  %v88_v55 = vsub.f32 %v236_v0, %v75_v29 }
 0x117   :  { %v81_v30 = vpop.xlane.xlu1 %80 }
 0x118   :  { %v82_v32 = vmul.f32 0.03125, %v81_v30 }
 0x11a   :  { %v84_v34 = vsub.f32 %v82_v32, %v83_v31 }
 0x11b   :  { %v102_v38 = vpop.xlane.xlu1 %101 }
 0x11c   :  { %v85_v40 = vmul.f32 1.032258, %v84_v34  ;;  %v103_v44 = vmul.f32 0.03125, %v102_v38 }
 0x11e   :  { %v86_v47 = vadd.f32 1e-05, %v85_v40 }
 0x12b   :  { %v60_v35 = vpop.xlane.xlu0 %59 }
 0x12c   :  { %v61_v37 = vmul.f32 0.03125, %v60_v35 }
 0x12e   :  { %v63_v39 = vsub.f32 %v61_v37, %v62_v36 }
 0x12f   :  { %v95_v41 = vpop.xlane.xlu0 %94 }
 0x130   :  { %v64_v42 = vmul.f32 1.032258, %v63_v39  ;;  %v96_v43 = vmul.f32 0.03125, %v95_v41 }
 0x132   :  { %v65_v45 = vadd.f32 1e-05, %v64_v42  ;;  %v104_v46 = vmul.f32 %v96_v43, %v96_v43  ;;  %v109_v56 = vsub.f32 %v236_v0, %v96_v43 }
 0x134   :  { %158 = vrsqrt.f32 %v65_v45  ;;  %v105_v48 = vsub.f32 %v103_v44, %v104_v46 }
 0x135   :  { %160 = vrsqrt.f32 %v86_v47 }
 0x136   :  { %v106_v49 = vmul.f32 1.032258, %v105_v48 }
 0x138   :  { %v107_v50 = vadd.f32 1e-05, %v106_v49 }
 0x13a   :  { %162 = vrsqrt.f32 %v107_v50 }
 0x141   :  { %v159_v52 = vpop.eup %158 }
 0x142   :  { %v68_v53 = vmul.f32 %v159_v52, %v67_v51  ;;  %v161_v54 = vpop.eup %160 }
 0x143   :  { %v89_v59 = vmul.f32 %v161_v54, %v88_v55 }
 0x144   :  { %v112_v57 = vsel %vm111_vm1, %v45_v26, %v68_v53 }
 0x145   :  { %v114_v62 = vsel %vm113_vm2, %v112_v57, %v89_v59 }
 0x147   :  { %v163_v58 = vpop.eup %162 }
 0x148   :  { %v110_v60 = vmul.f32 %v163_v58, %v109_v56 }
 0x14a   :  { %v116_v63 = vsel %vm115_vm3, %v114_v62, %v110_v60 }
 0x14b   :  { %v124_v2 = vmul.f32 %v149_v61, %v116_v63 }
 0x14d   :  { %v132_v0 = vadd.f32 %v150_v1, %v124_v2 }
 0x14f   :  { %133 = vst [vmem:[#allocation5] sm:$0xf] %v132_v0 }
 0x150   :  { %195 = shalt.err (!%p192_p9)
}
 0x151   :  { %143 = dma.vmem_to_hbm [thread:$0]  %s141_s24, 64, %s268_s3, [#allocation4]  }
 0x152   :  { %206 = dma.done.wait [#allocation4], 64  }
 0x153   :  { %207 = vsyncadd [#allocation4], 4294967232 }
 0x154   :  { %147 = vsyncpa [#allocation3], 1 }
 0x155   :  { %148 = vsyncpa [#allocation4], 1 }

</bundles_post_ra>
